<compile_context>
chip_gen: v7x
topology: tpu7x:2x2x1
jax: 0.10.0
libtpu: 0.0.40
codegen_flags: <defaults>
</compile_context>

<pallas_src>
import functools
import numpy as np
import jax
import jax.numpy as jnp
from jax import lax
from jax.experimental import pallas as pl
from jax.experimental.pallas import tpu as pltpu


# ----------------------------------------------------------------------------
# Pallas kernel: full-K matmul over 1..n K-partials with fused bias + ReLU
# (+ optional fused residual add).  bf16 inputs, f32 accumulation.
# ----------------------------------------------------------------------------
def _make_mm_kernel(n_parts, has_res, relu):
    def kernel(*refs):
        out_ref = refs[-1]
        acc = jnp.dot(refs[0][...], refs[1][...],
                      preferred_element_type=jnp.float32)
        for p in range(1, n_parts):
            acc = acc + jnp.dot(refs[2 * p][...], refs[2 * p + 1][...],
                                preferred_element_type=jnp.float32)
        acc = acc + refs[2 * n_parts][...]                  # bias row (1, tn) f32
        if has_res:
            acc = acc + refs[2 * n_parts + 1][...].astype(jnp.float32)
        if relu:
            acc = jnp.maximum(acc, 0.0)
        out_ref[...] = acc.astype(out_ref.dtype)
    return kernel


def _pick_tile(dim, candidates):
    for t in candidates:
        if dim % t == 0:
            return t
    if dim <= candidates[0]:
        return dim                 # small full-extent block (always legal)
    return candidates[-1]          # cdiv grid; Pallas masks the ragged last tile


def fused_matmul(parts, b_row, *, relu, residual=None, out_dtype=jnp.bfloat16):
    """out = act(sum_i x_i @ w_i + b [+ residual]).

    parts: sequence of (x_i (M, K_i) bf16, w_i (K_i, N) bf16) — a K-split
    matmul (used to fuse channel-concatenated decoder inputs without ever
    materializing the concatenation in HBM).
    """
    M = parts[0][0].shape[0]
    N = parts[0][1].shape[1]
    k_total = sum(x.shape[1] for x, _ in parts)

    tm = _pick_tile(M, (512, 256, 128))
    tn = _pick_tile(N, (256, 128))
    gm = pl.cdiv(M, tm)
    gn = pl.cdiv(N, tn)

    # Per-conv grid-axis order: stream whichever operand costs less to re-fetch.
    x_bytes = 2 * M * k_total
    w_bytes = 2 * k_total * N
    n_inner = (gm - 1) * w_bytes <= (gn - 1) * x_bytes   # True -> N axis innermost

    if n_inner:   # weights streamed, x block resident per row of the grid
        grid = (gm, gn)
        x_map = lambda i, j: (i, 0)
        w_map = lambda i, j: (0, j)
        o_map = lambda i, j: (i, j)
    else:         # x streamed, weight slab resident per column of the grid
        grid = (gn, gm)
        x_map = lambda j, i: (i, 0)
        w_map = lambda j, i: (0, j)
        o_map = lambda j, i: (i, j)

    in_specs, args = [], []
    blk_bytes = 0
    for x, w in parts:
        k = x.shape[1]
        in_specs.append(pl.BlockSpec((tm, k), x_map))     # full-K block: no K loop
        in_specs.append(pl.BlockSpec((k, tn), w_map))
        args.extend([x, w])
        blk_bytes += 2 * (tm * k + k * tn)
    in_specs.append(pl.BlockSpec((1, tn), w_map))         # bias row
    args.append(b_row)
    blk_bytes += 4 * tn

    has_res = residual is not None
    if has_res:
        in_specs.append(pl.BlockSpec((tm, tn), o_map))
        args.append(residual.astype(jnp.bfloat16))
        blk_bytes += 2 * tm * tn
    blk_bytes += tm * tn * jnp.dtype(out_dtype).itemsize

    # VMEM limit derived from the actual (double-buffered) block footprint,
    # capped well under v7x's 64 MiB physical VMEM.
    vmem_limit = int(min(max(2 * blk_bytes + (4 << 20), 32 << 20), 48 << 20))

    kernel = _make_mm_kernel(len(parts), has_res, relu)
    return pl.pallas_call(
        kernel,
        out_shape=jax.ShapeDtypeStruct((M, N), out_dtype),
        grid_spec=pltpu.PrefetchScalarGridSpec(
            num_scalar_prefetch=0,
            grid=grid,
            in_specs=in_specs,
            out_specs=pl.BlockSpec((tm, tn), o_map)),
        compiler_params=pltpu.CompilerParams(
            dimension_semantics=("parallel", "parallel"),
            vmem_limit_bytes=vmem_limit),
    )(*args)


# ----------------------------------------------------------------------------
# Conv2d = im2col (plain JAX glue) + Pallas matmul kernel.
# Weights are pre-laid-out as (K, N) bf16 at param-build time.
# ----------------------------------------------------------------------------
def _im2col(x, kh, kw, stride, pad):
    """x: (N,H,W,C) -> (N*Ho*Wo, kh*kw*C) with (kh, kw, C) flat ordering."""
    if pad > 0:
        x = jnp.pad(x, ((0, 0), (pad, pad), (pad, pad), (0, 0)))
    n, hp, wp, c = x.shape
    ho = (hp - kh) // stride + 1
    wo = (wp - kw) // stride + 1
    if kh == 1 and kw == 1 and stride == 1:
        return x.reshape(n * ho * wo, c), (n, ho, wo)     # 1x1 conv: pure reshape
    cols = []
    for i in range(kh):
        for j in range(kw):
            cols.append(x[:, i:i + (ho - 1) * stride + 1:stride,
                          j:j + (wo - 1) * stride + 1:stride, :])
    patches = jnp.concatenate(cols, axis=-1)              # (N,Ho,Wo,kh*kw*C)
    return patches.reshape(n * ho * wo, kh * kw * c), (n, ho, wo)


def conv2d(x, p, kh=1, kw=None, stride=1, pad=0, relu=False, residual=None,
           out_dtype=jnp.bfloat16):
    """x: NHWC bf16; p: {'w': (K,N) bf16, 'b': (1,N) f32} prebuilt."""
    kw = kh if kw is None else kw
    patches, (n, ho, wo) = _im2col(x, kh, kw, stride, pad)
    cout = p["w"].shape[1]
    res = None if residual is None else residual.reshape(n * ho * wo, cout)
    out = fused_matmul([(patches, p["w"])], p["b"], relu=relu, residual=res,
                       out_dtype=out_dtype)
    return out.reshape(n, ho, wo, cout)


def conv2d_cat2(xa, xb, p, relu=True):
    """3x3/pad1 conv applied to concat([xa, xb], channel) WITHOUT materializing
    the concatenation: K-split into two accumulating MXU matmuls in one kernel."""
    pa, (n, ho, wo) = _im2col(xa, 3, 3, 1, 1)
    pb, _ = _im2col(xb, 3, 3, 1, 1)
    cout = p["w1"].shape[1]
    out = fused_matmul([(pa, p["w1"]), (pb, p["w2"])], p["b"], relu=relu)
    return out.reshape(n, ho, wo, cout)


# ----------------------------------------------------------------------------
# Plain-JAX glue: maxpool, bilinear upsample (align_corners=True).
# ----------------------------------------------------------------------------
def maxpool3x3_s2(x):  # NHWC, kernel 3, stride 2, pad 1 (ResNet stem maxpool)
    init = jnp.array(-jnp.inf, dtype=x.dtype)
    return lax.reduce_window(x, init, lax.max,
                             (1, 3, 3, 1), (1, 2, 2, 1),
                             [(0, 0), (1, 1), (1, 1), (0, 0)])


def upsample2x_bilinear(x):  # NHWC, scale_factor=2, align_corners=True
    n, h, w, c = x.shape
    ho, wo = 2 * h, 2 * w
    xf = x.astype(jnp.float32)

    def coords(inp, out):
        scale = (inp - 1) / (out - 1) if out > 1 else 0.0
        src = jnp.arange(out, dtype=jnp.float32) * scale
        lo = jnp.floor(src).astype(jnp.int32)
        hi = jnp.minimum(lo + 1, inp - 1)
        frac = src - lo.astype(jnp.float32)
        return frac, lo, hi

    fh, hlo, hhi = coords(h, ho)
    fw, wlo, whi = coords(w, wo)
    top = (xf[:, hlo, :, :] * (1.0 - fh)[None, :, None, None]
           + xf[:, hhi, :, :] * fh[None, :, None, None])
    out = (top[:, :, wlo, :] * (1.0 - fw)[None, None, :, None]
           + top[:, :, whi, :] * fw[None, None, :, None])
    return out.astype(x.dtype)


# ----------------------------------------------------------------------------
# Deterministic parameter init (synthetic weights; BN folded into conv).
# All weights are relaid out to (K, N) bf16 + (1, N) f32 bias ONCE, here.
# ----------------------------------------------------------------------------
class KeyGen:
    def __init__(self, seed):
        self._key = jax.random.PRNGKey(seed)

    def __call__(self):
        self._key, k = jax.random.split(self._key)
        return k


def conv_w(kg, cout, cin, k):
    std = 1.0 / np.sqrt(cin * k * k)
    return std * jax.random.normal(kg(), (cout, cin, k, k), jnp.float32)


def conv_with_bias(kg, cin, cout, k):
    w = conv_w(kg, cout, cin, k)
    b = 0.01 * jax.random.normal(kg(), (cout,), jnp.float32)
    return w, b


def conv_bn_folded(kg, cin, cout, k):
    """Conv (no bias) + BatchNorm(eval) folded into a single (w, b)."""
    w = conv_w(kg, cout, cin, k)
    gamma = 1.0 + 0.1 * jax.random.normal(kg(), (cout,), jnp.float32)
    beta = 0.1 * jax.random.normal(kg(), (cout,), jnp.float32)
    mean = 0.1 * jax.random.normal(kg(), (cout,), jnp.float32)
    var = jax.random.uniform(kg(), (cout,), jnp.float32, 0.5, 1.5)
    scale = gamma / jnp.sqrt(var + 1e-5)
    return w * scale[:, None, None, None], beta - mean * scale


def _prep(w, b):
    cout, cin, kh, kw = w.shape
    wmat = jnp.transpose(w, (2, 3, 1, 0)).reshape(kh * kw * cin, cout)
    return {"w": wmat.astype(jnp.bfloat16),
            "b": b.astype(jnp.float32).reshape(1, cout)}


def _prep_split(w, b, c1):
    """Split a concat-input conv along Cin into two (K_i, N) matmul weights."""
    cout, cin, kh, kw = w.shape
    wt = jnp.transpose(w, (2, 3, 1, 0))                     # (kh, kw, cin, cout)
    w1 = wt[:, :, :c1].reshape(kh * kw * c1, cout)
    w2 = wt[:, :, c1:].reshape(kh * kw * (cin - c1), cout)
    return {"w1": w1.astype(jnp.bfloat16), "w2": w2.astype(jnp.bfloat16),
            "b": b.astype(jnp.float32).reshape(1, cout)}


def _prep_padN(w, b, n_pad=128):
    """Zero-pad Cout to a lane-dense 128 (unmasked stores); slice after."""
    cout, cin, kh, kw = w.shape
    wmat = jnp.transpose(w, (2, 3, 1, 0)).reshape(kh * kw * cin, cout)
    wmat = jnp.pad(wmat, ((0, 0), (0, n_pad - cout)))
    bpad = jnp.pad(b, (0, n_pad - cout))
    return {"w": wmat.astype(jnp.bfloat16),
            "b": bpad.astype(jnp.float32).reshape(1, n_pad)}


def make_basic_block(kg, cin, cout, stride):
    p = {"conv1": _prep(*conv_bn_folded(kg, cin, cout, 3)),
         "conv2": _prep(*conv_bn_folded(kg, cout, cout, 3))}
    if stride != 1 or cin != cout:
        p["down"] = _prep(*conv_bn_folded(kg, cin, cout, 1))
    return p


def make_params(n_class, seed=0):
    kg = KeyGen(seed)
    P = {}
    # encoder (ResNet18, eval-mode BN folded)
    P["l0_conv"] = _prep(*conv_bn_folded(kg, 3, 64, 7))   # 7x7 s2 p3 + bn + relu
    P["l1b0"] = make_basic_block(kg, 64, 64, 1)
    P["l1b1"] = make_basic_block(kg, 64, 64, 1)
    P["l2b0"] = make_basic_block(kg, 64, 128, 2)
    P["l2b1"] = make_basic_block(kg, 128, 128, 1)
    P["l3b0"] = make_basic_block(kg, 128, 256, 2)
    P["l3b1"] = make_basic_block(kg, 256, 256, 1)
    P["l4b0"] = make_basic_block(kg, 256, 512, 2)
    P["l4b1"] = make_basic_block(kg, 512, 512, 1)
    # 1x1 lateral convs (convrelu, with bias)
    P["l0_1x1"] = _prep(*conv_with_bias(kg, 64, 64, 1))
    P["l1_1x1"] = _prep(*conv_with_bias(kg, 64, 64, 1))
    P["l2_1x1"] = _prep(*conv_with_bias(kg, 128, 128, 1))
    P["l3_1x1"] = _prep(*conv_with_bias(kg, 256, 256, 1))
    P["l4_1x1"] = _prep(*conv_with_bias(kg, 512, 512, 1))
    # decoder: concat convs stored K-split (branch order = torch.cat order)
    P["up3"] = _prep_split(*conv_with_bias(kg, 256 + 512, 512, 3), c1=512)
    P["up2"] = _prep_split(*conv_with_bias(kg, 128 + 512, 256, 3), c1=512)
    P["up1"] = _prep_split(*conv_with_bias(kg, 64 + 256, 256, 3), c1=256)
    P["up0"] = _prep_split(*conv_with_bias(kg, 64 + 256, 128, 3), c1=256)
    P["os0"] = _prep(*conv_with_bias(kg, 3, 64, 3))
    P["os1"] = _prep(*conv_with_bias(kg, 64, 64, 3))
    P["os2"] = _prep_split(*conv_with_bias(kg, 64 + 128, 64, 3), c1=128)
    P["last"] = _prep_padN(*conv_with_bias(kg, 64, n_class, 1), n_pad=128)
    return P


# ----------------------------------------------------------------------------
# Forward pass (mirrors ResNetUNet.forward exactly).
# ----------------------------------------------------------------------------
def basic_block(x, p, stride):
    out = conv2d(x, p["conv1"], kh=3, stride=stride, pad=1, relu=True)
    if "down" in p:
        identity = conv2d(x, p["down"], kh=1, stride=stride, pad=0, relu=False)
    else:
        identity = x
    # conv2's bias-add, residual add and ReLU are fused into the Pallas epilogue.
    return conv2d(out, p["conv2"], kh=3, stride=1, pad=1, relu=True,
                  residual=identity)


def resnet_unet_forward(x_nchw, P, *, n_class):
    x = jnp.transpose(x_nchw, (0, 2, 3, 1)).astype(jnp.bfloat16)  # NCHW->NHWC

    x_original = conv2d(x, P["os0"], kh=3, pad=1, relu=True)
    x_original = conv2d(x_original, P["os1"], kh=3, pad=1, relu=True)

    layer0 = conv2d(x, P["l0_conv"], kh=7, stride=2, pad=3, relu=True)     # /2
    mp = maxpool3x3_s2(layer0)                                             # /4
    layer1 = basic_block(basic_block(mp, P["l1b0"], 1), P["l1b1"], 1)
    layer2 = basic_block(basic_block(layer1, P["l2b0"], 2), P["l2b1"], 1)  # /8
    layer3 = basic_block(basic_block(layer2, P["l3b0"], 2), P["l3b1"], 1)  # /16
    layer4 = basic_block(basic_block(layer3, P["l4b0"], 2), P["l4b1"], 1)  # /32

    layer4 = conv2d(layer4, P["l4_1x1"], relu=True)
    u = upsample2x_bilinear(layer4)
    layer3 = conv2d(layer3, P["l3_1x1"], relu=True)
    u = conv2d_cat2(u, layer3, P["up3"])        # cat + conv fused via K-split

    u = upsample2x_bilinear(u)
    layer2 = conv2d(layer2, P["l2_1x1"], relu=True)
    u = conv2d_cat2(u, layer2, P["up2"])

    u = upsample2x_bilinear(u)
    layer1 = conv2d(layer1, P["l1_1x1"], relu=True)
    u = conv2d_cat2(u, layer1, P["up1"])

    u = upsample2x_bilinear(u)
    layer0 = conv2d(layer0, P["l0_1x1"], relu=True)
    u = conv2d_cat2(u, layer0, P["up0"])

    u = upsample2x_bilinear(u)
    u = conv2d_cat2(u, x_original, P["os2"])

    out = conv2d(u, P["last"], relu=False, out_dtype=jnp.float32)
    out = out[..., :n_class]                    # drop lane-padding of logits

    return jnp.transpose(out, (0, 3, 1, 2))     # back to NCHW


# ----------------------------------------------------------------------------
if __name__ == "__main__":
    # Quick self-check of the fused K-split Pallas matmul on non-(8,128)-aligned
    # full-dim blocks (exercises the odd-shape path used by the convs).
    kx1, kw1, kx2, kw2 = jax.random.split(jax.random.PRNGKey(2), 4)
    x1 = jax.random.normal(kx1, (50, 27), jnp.float32)
    w1 = jax.random.normal(kw1, (27, 20), jnp.float32)
    x2 = jax.random.normal(kx2, (50, 13), jnp.float32)
    w2 = jax.random.normal(kw2, (13, 20), jnp.float32)
    bt = 0.1 * jnp.arange(20, dtype=jnp.float32)
    got = fused_matmul(
        [(x1.astype(jnp.bfloat16), w1.astype(jnp.bfloat16)),
         (x2.astype(jnp.bfloat16), w2.astype(jnp.bfloat16))],
        bt.reshape(1, 20), relu=True, out_dtype=jnp.float32)
    f32 = lambda a: a.astype(jnp.bfloat16).astype(jnp.float32)
    ref = jnp.maximum(f32(x1) @ f32(w1) + f32(x2) @ f32(w2) + bt, 0.0)
    assert bool(jnp.allclose(got, ref, rtol=2e-2, atol=2e-2)), "matmul check"

    n_class = 4
    params = make_params(n_class, seed=0)

    # spatial must be divisible by 32 (encoder downsamples /32)
    x = jax.random.normal(jax.random.PRNGKey(0), (1, 3, 64, 64), jnp.float32)

    fwd = jax.jit(functools.partial(resnet_unet_forward, n_class=n_class))
    out = fwd(x, params)
    out = jax.block_until_ready(out)

    assert out.shape == (1, n_class, 64, 64), out.shape
    assert out.dtype == jnp.float32
    assert bool(jnp.all(jnp.isfinite(out)))
    print("KERNEL_OK")
</pallas_src>

<mosaic_0001>
module attributes {stable_mosaic.version = 11 : i64} {
  func.func @kernel(%arg0: i32, %arg1: i32, %arg2: memref<50x27xbf16, #tpu.memory_space<vmem>>, %arg3: memref<27x20xbf16, #tpu.memory_space<vmem>>, %arg4: memref<50x13xbf16, #tpu.memory_space<vmem>>, %arg5: memref<13x20xbf16, #tpu.memory_space<vmem>>, %arg6: memref<1x20xf32, #tpu.memory_space<vmem>>, %arg7: memref<50x20xf32, #tpu.memory_space<vmem>>) attributes {dimension_semantics = [#tpu.dimension_semantics<parallel>, #tpu.dimension_semantics<parallel>], iteration_bounds = array<i64: 1, 1>, scalar_prefetch = 0 : i64, scratch_operands = 0 : i64, tpu.core_type = #tpu.core_type<tc>, window_params = [{transform_indices = @transform_0, window_bounds = array<i64: 50, 27>}, {transform_indices = @transform_1, window_bounds = array<i64: 27, 20>}, {transform_indices = @transform_2, window_bounds = array<i64: 50, 13>}, {transform_indices = @transform_3, window_bounds = array<i64: 13, 20>}, {transform_indices = @transform_4, window_bounds = array<i64: 1, 20>}, {transform_indices = @transform_5, window_bounds = array<i64: 50, 20>}]} {
    %c0 = arith.constant 0 : index
    %c0_0 = arith.constant 0 : index
    %0 = vector.load %arg2[%c0, %c0_0] : memref<50x27xbf16, #tpu.memory_space<vmem>>, vector<50x27xbf16>
    %c0_1 = arith.constant 0 : index
    %c0_2 = arith.constant 0 : index
    %1 = vector.load %arg3[%c0_1, %c0_2] : memref<27x20xbf16, #tpu.memory_space<vmem>>, vector<27x20xbf16>
    %cst = arith.constant dense<0.000000e+00> : vector<50x20xf32>
    %2 = tpu.matmul %0, %1, %cst {dimension_numbers = #tpu.dot_dimension_numbers<[1], [0], [0], [1], [0, 0, 1, 1], [], []>} : vector<50x27xbf16>, vector<27x20xbf16>, vector<50x20xf32> -> vector<50x20xf32>
    %c0_3 = arith.constant 0 : index
    %c0_4 = arith.constant 0 : index
    %3 = vector.load %arg4[%c0_3, %c0_4] : memref<50x13xbf16, #tpu.memory_space<vmem>>, vector<50x13xbf16>
    %c0_5 = arith.constant 0 : index
    %c0_6 = arith.constant 0 : index
    %4 = vector.load %arg5[%c0_5, %c0_6] : memref<13x20xbf16, #tpu.memory_space<vmem>>, vector<13x20xbf16>
    %cst_7 = arith.constant dense<0.000000e+00> : vector<50x20xf32>
    %5 = tpu.matmul %3, %4, %cst_7 {dimension_numbers = #tpu.dot_dimension_numbers<[1], [0], [0], [1], [0, 0, 1, 1], [], []>} : vector<50x13xbf16>, vector<13x20xbf16>, vector<50x20xf32> -> vector<50x20xf32>
    %6 = arith.addf %2, %5 : vector<50x20xf32>
    %c0_8 = arith.constant 0 : index
    %c0_9 = arith.constant 0 : index
    %7 = vector.load %arg6[%c0_8, %c0_9] : memref<1x20xf32, #tpu.memory_space<vmem>>, vector<1x20xf32>
    %8 = vector.broadcast %7 : vector<1x20xf32> to vector<50x20xf32>
    %9 = arith.addf %6, %8 : vector<50x20xf32>
    %cst_10 = arith.constant 0.000000e+00 : f32
    %10 = vector.broadcast %cst_10 : f32 to vector<50x20xf32>
    %11 = arith.maximumf %9, %10 : vector<50x20xf32>
    %c0_11 = arith.constant 0 : index
    %c0_12 = arith.constant 0 : index
    %12 = vector.load %arg7[%c0_11, %c0_12] : memref<50x20xf32, #tpu.memory_space<vmem>>, vector<50x20xf32>
    tpu.vector_store %arg7[%c0_11, %c0_12], %11 {strides = array<i32>} : memref<50x20xf32, #tpu.memory_space<vmem>>, vector<50x20xf32>,
    return
  }
  func.func @transform_0(%arg0: i32, %arg1: i32) -> (i32, i32) {
    %c0_i32 = arith.constant 0 : i32
    %c0_i32_0 = arith.constant 0 : i32
    return %arg0, %c0_i32 : i32, i32
  }
  func.func @transform_1(%arg0: i32, %arg1: i32) -> (i32, i32) {
    %c0_i32 = arith.constant 0 : i32
    %c0_i32_0 = arith.constant 0 : i32
    return %c0_i32, %arg1 : i32, i32
  }
  func.func @transform_2(%arg0: i32, %arg1: i32) -> (i32, i32) {
    %c0_i32 = arith.constant 0 : i32
    %c0_i32_0 = arith.constant 0 : i32
    return %arg0, %c0_i32 : i32, i32
  }
  func.func @transform_3(%arg0: i32, %arg1: i32) -> (i32, i32) {
    %c0_i32 = arith.constant 0 : i32
    %c0_i32_0 = arith.constant 0 : i32
    return %c0_i32, %arg1 : i32, i32
  }
  func.func @transform_4(%arg0: i32, %arg1: i32) -> (i32, i32) {
    %c0_i32 = arith.constant 0 : i32
    %c0_i32_0 = arith.constant 0 : i32
    return %c0_i32, %arg1 : i32, i32
  }
  func.func @transform_5(%arg0: i32, %arg1: i32) -> (i32, i32) {
    %c0_i32 = arith.constant 0 : i32
    return %arg0, %arg1 : i32, i32
  }
}

</mosaic_0001>

<bundles_post_ra>
// kernel: tpu_custom_call.1
= control target key start
LH: loop header
LB: loop body
LE: loop exit
PB: predicated region body
PF: predicated region fallthrough
CT: control target
= control target key end

     0   :  { %vm77_vm0 = vcmask 1045504   ;;  %vm78_vm1 = vcmask 1046528   ;;  %vm190_vm2 = vcmask 1044480   ;;  %v363_v1 = vmov 65535   ;;  %s461_s1 = inlined_call_operand.vmem [shape: bf16[27,20], index: 1, kind: input, shape index: {}]   ;;  %s462_s3 = inlined_call_operand.vmem [shape: bf16[13,20], index: 3, kind: input, shape index: {}]   ;;  %s463_s2 = inlined_call_operand.vmem [shape: bf16[50,13], index: 2, kind: input, shape index: {}]   ;;  %s464_s0 = inlined_call_operand.vmem [shape: bf16[50,27], index: 0, kind: input, shape index: {}]   ;;  %s465_s4 = inlined_call_operand.vmem [shape: f32[1,20], index: 4, kind: input, shape index: {}]   ;;  %s466_s5 = inlined_call_operand.vmem [shape: f32[50,20], index: 5, kind: output, shape index: {}]  }
   0x1   :  { %v352_v0 = vld [vmem:[%s461_s1] sm:$0xff]   ;;  %v79_v2 = vsel %vm77_vm0, 4294967295, %v363_v1  ;;  %v191_v5 = vsel %vm190_vm2, 4294967295, %v363_v1  ;;  %v354_v7 = vld [vmem:[%s461_s1 + $0x8] sm:$0x3f]   ;;  %vm64_vm3 = vcmask 105472  }
   0x2   :  { %v353_v3 = vld [vmem:[%s462_s3] sm:$0x7f]   ;;  %335 = vmatprep.subr.bf16.mxu0 %v352_v0  ;;  %v80_v4 = vsel %vm78_vm1, %v79_v2, 0  ;;  %v192_v8 = vsel %vm77_vm0, %v191_v5, 0  ;;  %v356_v10 = vld [vmem:[%s463_s2 + $0x8] sm:$0xff]   ;;  %vm177_vm4 = vcmask 220160  }
   0x3   :  { %336 = vmatpush3.bf16.msra.mxu0 %v352_v0  ;;  %v82_v6 = vand.u32 %v353_v3, %v80_v4  ;;  %v355_v9 = vld [vmem:[%s463_s2] sm:$0xff]   ;;  %v194_v11 = vand.u32 %v354_v7, %v192_v8  ;;  %v358_v13 = vld [vmem:[%s464_s0 + $0x8] sm:$0xff]   ;;  %v359_v14 = vld [vmem:[%s463_s2 + $0x10] sm:$0xff]   ;;  %vm281_vm5 = vcmask 162816   ;;  %vm288_vm6 = vcmask 156672  }
   0x4   :  { %327 = vmatprep.mubr.msk.bf16.mxu1 %vm64_vm3, %v355_v9  ;;  %v357_v12 = vld [vmem:[%s464_s0] sm:$0xff]   ;;  %v361_v15 = vld [vmem:[%s464_s0 + $0x10] sm:$0xff]   ;;  %v360_v16 = vld [vmem:[%s463_s2 + $0x18] ss:$0 sps:$4 sm:$0x11]  }
   0x5   :  { %325 = vmatprep.subr.bf16.mxu1 %v82_v6  ;;  %337 = vmatprep.subr.bf16.mxu0 %v194_v11  ;;  %v362_v17 = vld [vmem:[%s464_s0 + $0x18] ss:$0 sps:$4 sm:$0x11]   ;;  %v313_v22 = vld [vmem:[%s465_s4] ss:$0 sm:$0xff] }
   0x6   :  { %326 = vmatpush3.bf16.msra.mxu1 %v82_v6  ;;  %339 = vmatprep.mubr.msk.bf16.mxu0 %vm177_vm4, %v357_v12 }
   0x7   :  { %338 = vmatpush3.bf16.msra.mxu0 %v194_v11 }
   0x9   :  { %328 = vmatmul.mubr.msk.bf16.vlgmr.msra.gmra.mrb[0].mxu1 %vm64_vm3, %v356_v10 }
   0xa   :  { %331 = vmatprep.mubr.msk.bf16.mxu1 %vm64_vm3, %v359_v14  ;;  %340 = vmatmul.mubr.msk.bf16.vlgmr.msra.gmra.mrb[0].mxu0 %vm177_vm4, %v358_v13 }
   0xb   :  { %343 = vmatprep.mubr.msk.bf16.mxu0 %vm177_vm4, %v361_v15 }
  0x11   :  { %332 = vmatmul.mubr.msk.bf16.gmra.mrb[4].mxu1 %vm64_vm3, %v360_v16 }
  0x12   :  { %344 = vmatmul.mubr.msk.bf16.gmra.mrb[4].mxu0 %vm177_vm4, %v362_v17 }
  0xdc   :  { %v329_v18 = vpop.f32.mrb[0].mxu1 }
  0xdd   :  { %v118_v19 = vpop.f32.mrb[1].mxu1  ;;  %v341_v21 = vpop.f32.mrb[0].mxu0 }
  0xde   :  { %v330_v20 = vpop.f32.mrb[2].mxu1  ;;  %v239_v23 = vadd.f32 %v341_v21, %v329_v18  ;;  %v230_v25 = vpop.f32.mrb[1].mxu0 }
  0xdf   :  { %v121_v24 = vpop.f32.mrb[3].mxu1  ;;  %v231_v26 = vadd.f32 %v230_v25, %v118_v19  ;;  %v342_v27 = vpop.f32.mrb[2].mxu0 }
  0xe0   :  { %v269_v28 = vadd.f32 %v313_v22, %v239_v23  ;;  %v242_v29 = vadd.f32 %v342_v27, %v330_v20  ;;  %v233_v30 = vpop.f32.mrb[3].mxu0 }
  0xe1   :  { %v267_v31 = vadd.f32 %v313_v22, %v231_v26  ;;  %v234_v32 = vadd.f32 %v233_v30, %v121_v24 }
  0xe2   :  { %v276_v33 = vmax.f32 %v269_v28, 0.0  ;;  %v270_v34 = vadd.f32 %v313_v22, %v242_v29 }
  0xe3   :  { %v274_v35 = vmax.f32 %v267_v31, 0.0  ;;  %v268_v36 = vadd.f32 %v313_v22, %v234_v32 }
  0xe4   :  { %v333_v37 = vpop.f32.mrb[4].mxu1  ;;  %284 = vst.msk [vmem:[%s466_s5 + $0x10] sm:$0xff] %vm281_vm5, %v276_v33  ;;  %v277_v38 = vmax.f32 %v270_v34, 0.0 }
  0xe5   :  { %v134_v39 = vpop.f32.mrb[5].mxu1  ;;  %282 = vst.msk [vmem:[%s466_s5] sm:$0xff] %vm281_vm5, %v274_v35  ;;  %v275_v40 = vmax.f32 %v268_v36, 0.0  ;;  %v345_v42 = vpop.f32.mrb[4].mxu0 }
  0xe6   :  { %v334_v41 = vpop.f32.mrb[6].mxu1  ;;  %285 = vst.msk [vmem:[%s466_s5 + $0x18] sm:$0xff] %vm281_vm5, %v277_v38  ;;  %v255_v43 = vadd.f32 %v345_v42, %v333_v37  ;;  %v246_v45 = vpop.f32.mrb[5].mxu0 }
  0xe7   :  { %v137_v44 = vpop.f32.mrb[7].mxu1  ;;  %283 = vst.msk [vmem:[%s466_s5 + $0x8] sm:$0xff] %vm281_vm5, %v275_v40  ;;  %v247_v46 = vadd.f32 %v246_v45, %v134_v39  ;;  %v346_v47 = vpop.f32.mrb[6].mxu0 }
  0xe8   :  { %v273_v48 = vadd.f32 %v313_v22, %v255_v43  ;;  %v249_v49 = vpop.f32.mrb[7].mxu0 }
  0xe9   :  { %v271_v50 = vadd.f32 %v313_v22, %v247_v46  ;;  %v250_v51 = vadd.f32 %v249_v49, %v137_v44 }
  0xea   :  { %v280_v52 = vmax.f32 %v273_v48, 0.0 }
  0xeb   :  { %v278_v53 = vmax.f32 %v271_v50, 0.0  ;;  %v272_v54 = vadd.f32 %v313_v22, %v250_v51 }
  0xec   :  { %289 = vst.msk [vmem:[%s466_s5 + $0x30] sm:$0x3] %vm288_vm6, %v280_v52 }
  0xed   :  { %286 = vst.msk [vmem:[%s466_s5 + $0x20] sm:$0xff] %vm281_vm5, %v278_v53  ;;  %v279_v55 = vmax.f32 %v272_v54, 0.0 }
  0xef   :  { %287 = vst.msk [vmem:[%s466_s5 + $0x28] sm:$0xff] %vm281_vm5, %v279_v55 }

</bundles_post_ra>
